<compile_context>
chip_gen: v6e
topology: v6e:2x2x1
jax: 0.10.0
libtpu: 0.0.40
codegen_flags: <defaults>
</compile_context>

<pallas_src>
import functools

import jax
import jax.numpy as jnp
from jax.experimental import pallas as pl
from jax.experimental.pallas import tpu as pltpu


def _uncertainty_focal_loss_kernel(
    pred_ref, tgt_ref, unc_ref, out_ref, acc_ref,
    *, alpha, gamma, uw, batch, block_rows, lanes,
):
    i = pl.program_id(0)

    @pl.when(i == 0)
    def _():
        acc_ref[...] = jnp.zeros_like(acc_ref)

    shape = (block_rows, lanes)
    row = jax.lax.broadcasted_iota(jnp.int32, shape, 0)
    col = jax.lax.broadcasted_iota(jnp.int32, shape, 1)
    idx = (i * block_rows + row) * lanes + col
    valid = idx < batch

    # Sanitize before any math so garbage in ragged/OOB regions cannot poison the sum.
    x = jnp.where(valid, pred_ref[...].astype(jnp.float32), 0.0)
    t = jnp.where(valid, tgt_ref[...].astype(jnp.float32), 0.0)
    u = jnp.where(valid, unc_ref[...].astype(jnp.float32), 0.0)

    # One exp reused for both sigmoid and the stable BCE-with-logits term.
    e = jnp.exp(-jnp.abs(x))                       # exp(-|x|)
    inv = pl.reciprocal(1.0 + e, approx=True)      # 1 / (1 + exp(-|x|))
    probs = jnp.where(x >= 0.0, inv, e * inv)      # sigmoid(x)

    # bce = max(x,0) - x*t + log(1 + exp(-|x|))   (matches F.binary_cross_entropy_with_logits)
    bce = jnp.maximum(x, 0.0) - x * t + jnp.log1p(e)

    pt = probs * t + (1.0 - probs) * (1.0 - t)
    one_m_pt = jnp.maximum(1.0 - pt, 0.0)          # clamp against tiny negative rounding
    if gamma == 2.0:
        focal_weight = one_m_pt * one_m_pt         # single VALU mul instead of pow
    elif gamma == 0.0:
        focal_weight = jnp.ones_like(one_m_pt)
    else:
        focal_weight = jnp.where(
            one_m_pt > 0.0,
            jnp.exp(gamma * jnp.log(jnp.maximum(one_m_pt, 1e-30))),
            0.0,
        )
    alpha_weight = alpha * t + (1.0 - alpha) * (1.0 - t)
    focal = alpha_weight * focal_weight * bce

    unc_term = u * jnp.abs(probs - t)

    contrib = jnp.where(valid, focal + uw * unc_term, 0.0)
    acc_ref[...] += contrib

    @pl.when(i == pl.num_programs(0) - 1)
    def _():
        out_ref[0, 0] = jnp.sum(acc_ref[...])


def uncertainty_loss(
    predictions, targets, uncertainty,
    *, alpha=0.25, gamma=2.0, uncertainty_weight=0.1, block_rows=512,
):
    """UncertaintyLoss forward for 1-D [B] logits/targets/uncertainty. Returns a scalar."""
    assert predictions.shape == targets.shape == uncertainty.shape
    assert predictions.ndim == 1
    b = predictions.shape[0]
    lanes = 128

    rows = -(-b // lanes)                 # ceil(B / 128)
    padded = rows * lanes

    # Clamp the block height for tiny inputs; keep it a multiple of 8 (sublane rule).
    block_rows = int(max(8, min(int(block_rows), -(-rows // 8) * 8)))
    n_blocks = -(-rows // block_rows)

    def to2d(a):
        if padded != b:                   # only a <=127-element pad to make the 2-D view legal
            a = jnp.pad(a, (0, padded - b))
        return a.reshape(rows, lanes)

    p2, t2, u2 = to2d(predictions), to2d(targets), to2d(uncertainty)

    kernel = functools.partial(
        _uncertainty_focal_loss_kernel,
        alpha=float(alpha), gamma=float(gamma), uw=float(uncertainty_weight),
        batch=int(b), block_rows=block_rows, lanes=lanes,
    )

    itemsize = (
        predictions.dtype.itemsize
        + targets.dtype.itemsize
        + uncertainty.dtype.itemsize
    )
    cost = pl.CostEstimate(
        flops=30 * b,
        transcendentals=3 * b,
        bytes_accessed=b * itemsize + 4,
    )

    total = pl.pallas_call(
        kernel,
        out_shape=jax.ShapeDtypeStruct((1, 1), jnp.float32),
        grid_spec=pltpu.PrefetchScalarGridSpec(
            num_scalar_prefetch=0,
            grid=(n_blocks,),
            in_specs=[
                pl.BlockSpec((block_rows, lanes), lambda i: (i, 0)),
                pl.BlockSpec((block_rows, lanes), lambda i: (i, 0)),
                pl.BlockSpec((block_rows, lanes), lambda i: (i, 0)),
            ],
            out_specs=pl.BlockSpec(memory_space=pltpu.SMEM),
            scratch_shapes=[pltpu.VMEM((block_rows, lanes), jnp.float32)],
        ),
        compiler_params=pltpu.CompilerParams(
            dimension_semantics=("arbitrary",),
        ),
        cost_estimate=cost,
    )(p2, t2, u2)[0, 0]

    return total / jnp.float32(b)


def _reference_uncertainty_loss(predictions, targets, uncertainty,
                                alpha=0.25, gamma=2.0, uncertainty_weight=0.1):
    # Pure-JAX mirror of the PyTorch forward (focal base, mean reduction).
    x = predictions.astype(jnp.float32)
    t = targets.astype(jnp.float32)
    u = uncertainty.astype(jnp.float32)
    probs = jax.nn.sigmoid(x)
    bce = jnp.maximum(x, 0.0) - x * t + jnp.log1p(jnp.exp(-jnp.abs(x)))
    pt = probs * t + (1.0 - probs) * (1.0 - t)
    fw = (1.0 - pt) ** gamma
    aw = alpha * t + (1.0 - alpha) * (1.0 - t)
    base = jnp.mean(aw * fw * bce)
    unc = jnp.mean(u * jnp.abs(probs - t))
    return base + uncertainty_weight * unc


if __name__ == "__main__":
    key = jax.random.PRNGKey(0)
    k1, k2, k3 = jax.random.split(key, 3)

    # Ragged batch (not a multiple of 128) with a small block height so the test
    # exercises multi-step pipelining, the accumulator, and the in-kernel tail mask.
    batch = 2100
    predictions = jax.random.normal(k1, (batch,), dtype=jnp.float32)          # logits [B]
    targets = jax.random.bernoulli(k2, p=0.3, shape=(batch,)).astype(jnp.float32)
    uncertainty = jax.random.uniform(k3, (batch,), dtype=jnp.float32)

    out = uncertainty_loss(predictions, targets, uncertainty,
                           alpha=0.25, gamma=2.0, uncertainty_weight=0.1,
                           block_rows=8)
    out = jax.block_until_ready(out)
    ref = _reference_uncertainty_loss(predictions, targets, uncertainty)
    assert jnp.allclose(out, ref, rtol=2e-3, atol=1e-6), (out, ref)

    # Aligned batch (multiple of 128): no wrapper pad, single block, default tiling path.
    batch2 = 1024
    p2 = jax.random.normal(k1, (batch2,), dtype=jnp.float32)
    t2 = jax.random.bernoulli(k2, p=0.5, shape=(batch2,)).astype(jnp.float32)
    u2 = jax.random.uniform(k3, (batch2,), dtype=jnp.float32)
    out2 = jax.block_until_ready(uncertainty_loss(p2, t2, u2))
    ref2 = _reference_uncertainty_loss(p2, t2, u2)
    assert jnp.allclose(out2, ref2, rtol=2e-3, atol=1e-6), (out2, ref2)

    print("KERNEL_OK")
</pallas_src>

<mosaic_0001>
module attributes {stable_mosaic.version = 11 : i64} {
  func.func @_uncertainty_focal_loss_kernel(%arg0: i32, %arg1: memref<8x128xf32, #tpu.memory_space<vmem>>, %arg2: memref<8x128xf32, #tpu.memory_space<vmem>>, %arg3: memref<8x128xf32, #tpu.memory_space<vmem>>, %arg4: memref<1x1xf32, #tpu.memory_space<smem>>, %arg5: memref<8x128xf32, #tpu.memory_space<vmem>>) attributes {dimension_semantics = [#tpu.dimension_semantics<arbitrary>], iteration_bounds = array<i64: 3>, scalar_prefetch = 0 : i64, scratch_operands = 1 : i64, tpu.core_type = #tpu.core_type<tc>, window_params = [{transform_indices = @transform_0, window_bounds = array<i64: 8, 128>}, {transform_indices = @transform_1, window_bounds = array<i64: 8, 128>}, {transform_indices = @transform_2, window_bounds = array<i64: 8, 128>}, {transform_indices = @transform_3, window_bounds = array<i64: 1, 1>}]} {
    %c0_i32 = arith.constant 0 : i32
    %0 = arith.cmpi eq, %arg0, %c0_i32 : i32
    %1 = arith.extui %0 : i1 to i32
    %c0_i32_0 = arith.constant 0 : i32
    %2 = arith.cmpi ne, %1, %c0_i32_0 : i32
    scf.if %2 {
      %cst_26 = arith.constant 0.000000e+00 : f32
      %74 = vector.broadcast %cst_26 : f32 to vector<8x128xf32>
      %c0_27 = arith.constant 0 : index
      %c0_28 = arith.constant 0 : index
      %75 = vector.load %arg5[%c0_27, %c0_28] : memref<8x128xf32, #tpu.memory_space<vmem>>, vector<8x128xf32>
      tpu.vector_store %arg5[%c0_27, %c0_28], %74 {strides = array<i32>} : memref<8x128xf32, #tpu.memory_space<vmem>>, vector<8x128xf32>,
    } else {
    }
    %3 = tpu.iota {dimensions = array<i32: 0>} : vector<8x128xi32>
    %4 = tpu.iota {dimensions = array<i32: 1>} : vector<8x128xi32>
    %c8_i32 = arith.constant 8 : i32
    %5 = arith.muli %arg0, %c8_i32 : i32
    %6 = vector.broadcast %5 : i32 to vector<8x128xi32>
    %7 = arith.addi %6, %3 : vector<8x128xi32>
    %c128_i32 = arith.constant 128 : i32
    %8 = vector.broadcast %c128_i32 : i32 to vector<8x128xi32>
    %9 = arith.muli %7, %8 : vector<8x128xi32>
    %10 = arith.addi %9, %4 : vector<8x128xi32>
    %c2100_i32 = arith.constant 2100 : i32
    %11 = vector.broadcast %c2100_i32 : i32 to vector<8x128xi32>
    %12 = arith.cmpi slt, %10, %11 : vector<8x128xi32>
    %c0 = arith.constant 0 : index
    %c0_1 = arith.constant 0 : index
    %13 = vector.load %arg1[%c0, %c0_1] : memref<8x128xf32, #tpu.memory_space<vmem>>, vector<8x128xf32>
    %cst = arith.constant 0.000000e+00 : f32
    %14 = vector.broadcast %cst : f32 to vector<8x128xf32>
    %15 = arith.select %12, %13, %14 : vector<8x128xi1>, vector<8x128xf32>
    %c0_2 = arith.constant 0 : index
    %c0_3 = arith.constant 0 : index
    %16 = vector.load %arg2[%c0_2, %c0_3] : memref<8x128xf32, #tpu.memory_space<vmem>>, vector<8x128xf32>
    %cst_4 = arith.constant 0.000000e+00 : f32
    %17 = vector.broadcast %cst_4 : f32 to vector<8x128xf32>
    %18 = arith.select %12, %16, %17 : vector<8x128xi1>, vector<8x128xf32>
    %c0_5 = arith.constant 0 : index
    %c0_6 = arith.constant 0 : index
    %19 = vector.load %arg3[%c0_5, %c0_6] : memref<8x128xf32, #tpu.memory_space<vmem>>, vector<8x128xf32>
    %cst_7 = arith.constant 0.000000e+00 : f32
    %20 = vector.broadcast %cst_7 : f32 to vector<8x128xf32>
    %21 = arith.select %12, %19, %20 : vector<8x128xi1>, vector<8x128xf32>
    %22 = math.absf %15 : vector<8x128xf32>
    %cst_8 = arith.constant 0.000000e+00 : f32
    %23 = vector.broadcast %cst_8 : f32 to vector<8x128xf32>
    %24 = arith.subf %23, %22 : vector<8x128xf32>
    %25 = math.exp %24 : vector<8x128xf32>
    %cst_9 = arith.constant 1.000000e+00 : f32
    %26 = vector.broadcast %cst_9 : f32 to vector<8x128xf32>
    %27 = arith.addf %26, %25 : vector<8x128xf32>
    %28 = tpu.reciprocal %27 {approx = true} : vector<8x128xf32> -> vector<8x128xf32>
    %cst_10 = arith.constant 0.000000e+00 : f32
    %29 = vector.broadcast %cst_10 : f32 to vector<8x128xf32>
    %30 = arith.cmpf oge, %15, %29 : vector<8x128xf32>
    %31 = arith.mulf %25, %28 : vector<8x128xf32>
    %32 = arith.select %30, %28, %31 : vector<8x128xi1>, vector<8x128xf32>
    %cst_11 = arith.constant 0.000000e+00 : f32
    %33 = vector.broadcast %cst_11 : f32 to vector<8x128xf32>
    %34 = arith.maximumf %15, %33 : vector<8x128xf32>
    %35 = arith.mulf %15, %18 : vector<8x128xf32>
    %36 = arith.subf %34, %35 : vector<8x128xf32>
    %37 = math.log1p %25 : vector<8x128xf32>
    %38 = arith.addf %36, %37 : vector<8x128xf32>
    %39 = arith.mulf %32, %18 : vector<8x128xf32>
    %cst_12 = arith.constant 1.000000e+00 : f32
    %40 = vector.broadcast %cst_12 : f32 to vector<8x128xf32>
    %41 = arith.subf %40, %32 : vector<8x128xf32>
    %cst_13 = arith.constant 1.000000e+00 : f32
    %42 = vector.broadcast %cst_13 : f32 to vector<8x128xf32>
    %43 = arith.subf %42, %18 : vector<8x128xf32>
    %44 = arith.mulf %41, %43 : vector<8x128xf32>
    %45 = arith.addf %39, %44 : vector<8x128xf32>
    %cst_14 = arith.constant 1.000000e+00 : f32
    %46 = vector.broadcast %cst_14 : f32 to vector<8x128xf32>
    %47 = arith.subf %46, %45 : vector<8x128xf32>
    %cst_15 = arith.constant 0.000000e+00 : f32
    %48 = vector.broadcast %cst_15 : f32 to vector<8x128xf32>
    %49 = arith.maximumf %47, %48 : vector<8x128xf32>
    %50 = arith.mulf %49, %49 : vector<8x128xf32>
    %cst_16 = arith.constant 2.500000e-01 : f32
    %51 = vector.broadcast %cst_16 : f32 to vector<8x128xf32>
    %52 = arith.mulf %51, %18 : vector<8x128xf32>
    %cst_17 = arith.constant 1.000000e+00 : f32
    %53 = vector.broadcast %cst_17 : f32 to vector<8x128xf32>
    %54 = arith.subf %53, %18 : vector<8x128xf32>
    %cst_18 = arith.constant 7.500000e-01 : f32
    %55 = vector.broadcast %cst_18 : f32 to vector<8x128xf32>
    %56 = arith.mulf %55, %54 : vector<8x128xf32>
    %57 = arith.addf %52, %56 : vector<8x128xf32>
    %58 = arith.mulf %57, %50 : vector<8x128xf32>
    %59 = arith.mulf %58, %38 : vector<8x128xf32>
    %60 = arith.subf %32, %18 : vector<8x128xf32>
    %61 = math.absf %60 : vector<8x128xf32>
    %62 = arith.mulf %21, %61 : vector<8x128xf32>
    %cst_19 = arith.constant 1.000000e-01 : f32
    %63 = vector.broadcast %cst_19 : f32 to vector<8x128xf32>
    %64 = arith.mulf %63, %62 : vector<8x128xf32>
    %65 = arith.addf %59, %64 : vector<8x128xf32>
    %cst_20 = arith.constant 0.000000e+00 : f32
    %66 = vector.broadcast %cst_20 : f32 to vector<8x128xf32>
    %67 = arith.select %12, %65, %66 : vector<8x128xi1>, vector<8x128xf32>
    %c0_21 = arith.constant 0 : index
    %c0_22 = arith.constant 0 : index
    %68 = vector.load %arg5[%c0_21, %c0_22] : memref<8x128xf32, #tpu.memory_space<vmem>>, vector<8x128xf32>
    %69 = arith.addf %68, %67 : vector<8x128xf32>
    %c0_23 = arith.constant 0 : index
    %c0_24 = arith.constant 0 : index
    %70 = vector.load %arg5[%c0_23, %c0_24] : memref<8x128xf32, #tpu.memory_space<vmem>>, vector<8x128xf32>
    tpu.vector_store %arg5[%c0_23, %c0_24], %69 {strides = array<i32>} : memref<8x128xf32, #tpu.memory_space<vmem>>, vector<8x128xf32>,
    %c2_i32 = arith.constant 2 : i32
    %71 = arith.cmpi eq, %arg0, %c2_i32 : i32
    %72 = arith.extui %71 : i1 to i32
    %c0_i32_25 = arith.constant 0 : i32
    %73 = arith.cmpi ne, %72, %c0_i32_25 : i32
    scf.if %73 {
      %c0_26 = arith.constant 0 : index
      %c0_27 = arith.constant 0 : index
      %74 = vector.load %arg5[%c0_26, %c0_27] : memref<8x128xf32, #tpu.memory_space<vmem>>, vector<8x128xf32>
      %75 = vector.shape_cast %74 : vector<8x128xf32> to vector<1x8x128xf32>
      %cst_28 = arith.constant dense<0.000000e+00> : vector<1xf32>
      %76 = vector.multi_reduction <add>, %75, %cst_28 [1, 2] : vector<1x8x128xf32> to vector<1xf32>
      %77 = vector.shape_cast %76 : vector<1xf32> to vector<1x1x1xf32>
      %78 = vector.extract %77[0, 0, 0] : f32 from vector<1x1x1xf32>
      %c0_29 = arith.constant 0 : index
      %c0_30 = arith.constant 0 : index
      %79 = memref.load %arg4[%c0_29, %c0_30] : memref<1x1xf32, #tpu.memory_space<smem>>
      memref.store %78, %arg4[%c0_29, %c0_30] : memref<1x1xf32, #tpu.memory_space<smem>>
    } else {
    }
    return
  }
  func.func @transform_0(%arg0: i32) -> (i32, i32) {
    %c0_i32 = arith.constant 0 : i32
    %c0_i32_0 = arith.constant 0 : i32
    return %arg0, %c0_i32 : i32, i32
  }
  func.func @transform_1(%arg0: i32) -> (i32, i32) {
    %c0_i32 = arith.constant 0 : i32
    %c0_i32_0 = arith.constant 0 : i32
    return %arg0, %c0_i32 : i32, i32
  }
  func.func @transform_2(%arg0: i32) -> (i32, i32) {
    %c0_i32 = arith.constant 0 : i32
    %c0_i32_0 = arith.constant 0 : i32
    return %arg0, %c0_i32 : i32, i32
  }
  func.func @transform_3(%arg0: i32) -> (i32, i32) {
    %c0_i32 = arith.constant 0 : i32
    %c0_i32_0 = arith.constant 0 : i32
    %c0_i32_1 = arith.constant 0 : i32
    return %c0_i32, %c0_i32_0 : i32, i32
  }
}

</mosaic_0001>

<bundles_post_ra>
// kernel: tpu_custom_call.1
= control target key start
LH: loop header
LB: loop body
LE: loop exit
PB: predicated region body
PF: predicated region fallthrough
CT: control target
= control target key end

     0   :  { %8 = vsyncpa [#allocation4], 0  ;;  %s860_s0 = inlined_call_operand.hbm [shape: f32[17,128], index: 0, kind: input, shape index: {}]   ;;  %s861_s1 = inlined_call_operand.hbm [shape: f32[17,128], index: 1, kind: input, shape index: {}]   ;;  %s862_s2 = inlined_call_operand.hbm [shape: f32[17,128], index: 2, kind: input, shape index: {}]   ;;  %s863_s3 = inlined_call_operand.hbm [shape: f32[1,1], index: 3, kind: output, shape index: {}]  }
   0x1   :  { %10 = vsyncpa [#allocation4 + $0x1], 0 }
   0x2   :  { %11 = vsyncpa [#allocation7], 0 }
   0x3   :  { %13 = vsyncpa [#allocation7 + $0x1], 0 }
   0x4   :  { %14 = vsyncpa [#allocation5], 0  ;;  %s673_s12 = smov 0   ;;  %s675_s13 = smov 0  }
   0x5   :  { %s677_s14 = smov 0   ;;  %s679_s15 = smov 0  }
   0x6 LB: > { %s692_s16 = sadd.s32 4294967295, %s646_s15   ;;  %s695_s17 = sadd.s32 1, %s646_s15   ;;  %s646_s15 = sphi %s679_s15, %s876_s15   ;;  %s642_s14 = sphi %s677_s14, %s875_s14   ;;  %s638_s13 = sphi %s675_s13, %s874_s13   ;;  %s634_s12 = sphi %s673_s12, %s873_s12  }
   0x7   : > { %s24_s18 = ssub.s32 %s646_s15, %s695_s17  ;;  %s27_s19 = sadd.s32 1, %s642_s14 }
   0x8   : > { %p25_p0 = scmp.eq.s32.totalorder %s24_s18, 0  ;;  %p34_p1 = scmp.ne.s32.totalorder %s642_s14, %s638_s13 }
   0x9   : > { %p35_p2 = scmp.eq.s32.totalorder %s646_s15, 0  ;;  %p40_p3 = scmp.ne.s32.totalorder %s638_s13, %s634_s12 }
   0xa   : > { %s705_s20 = scalar_select %p25_p0, %s642_s14, %s27_s19  }
   0xb   : > { %p36_p4 = por %p35_p2, %p34_p1  ;;  %p41_p5 = scmp.eq.s32.totalorder %s692_s16, 0 }
   0xc   : > { %p467_p6 = scmp.lt.s32.totalorder %s646_s15, 3  ;;  %s137_s22 = sand.u32 1, %s642_s14  }
   0xd   : > { %p709_p7 = por %p41_p5, %p40_p3  ;;  %s716_s23 = sshll.u32 %s137_s22, 3 }
   0xe   : > { %s719_s24 = sshll.u32 %s646_s15, 7  ;;  %p721_p8 = pnand %p467_p6, %p36_p4 }
   0xf   : > { %s865_s21 = scalar_select %p709_p7, 1, 0 }
  0x10   : > { %s155_s26 = sand.u32 1, %s646_s15   ;;  %s730_s29 = scalar_lea.hbm %s861_s1, %s719_s24 }
  0x11   : > { %s159_s30 = scalar_lea.vmem [#allocation6], %s716_s23  ;;  %s735_s5 = scalar_lea.sflag [#allocation7], %s155_s26 }
  0x12   : > { %s166_s4 = sshll.u32 %s159_s30, 4  ;;  %s510_s6 = scalar_lea.hbm %s730_s29, 128  ;;  %s167_s4 = int_to_ptr.vmem [resolvable:$true] %s166_s4 }
  0x13   : > { %p511_p11 = scmp.ne.s32.totalorder %s730_s29, %s510_s6  ;;  %p741_p12 = pneg %p721_p8 }
  0x14   : > { %s515_s10 = scalar_lea.hbm %s861_s1, 384  ;;  %p516_p1 = scmp.lt.s32.totalorder %s730_s29, %s861_s1 }
  0x15   : > { %p513_p13 = pnand %p741_p12, %p511_p11  ;;  %p517_p2 = scmp.lt.s32.totalorder %s515_s10, %s510_s6 }
  0x17   : > { %p514_p0 = pneg %p513_p13  ;;  %p518_p3 = por %p517_p2, %p516_p1 }
  0x19   : > { %p519_p4 = pnand %p518_p3, %p514_p0 }
  0x1b   : > { %522 = shalt.err (!%p519_p4)
}
  0x1c   : > { %s523_s18 = scalar_lea.vmem %s167_s4, 128  ;;  %s648_s19 = smov [#allocation6]  }
  0x1d   : > { %p524_p5 = scmp.ne.s32.totalorder %s167_s4, %s523_s18  ;;  %s528_s26 = sshll.u32 %s648_s19, 4  ;;  %s529_s26 = int_to_ptr.vmem [resolvable:$false] %s528_s26 }
  0x1e   : > { %s530_s27 = scalar_lea.vmem %s529_s26, 256  ;;  %p531_p11 = scmp.lt.s32.totalorder %s167_s4, %s529_s26 }
  0x1f   : > { %p526_p6 = pnand %p524_p5, %p741_p12  ;;  %p532_p13 = scmp.lt.s32.totalorder %s530_s27, %s523_s18 }
  0x21   : > { %p527_p9 = pneg %p526_p6  ;;  %p533_p10 = por %p532_p13, %p531_p11 }
  0x23   : > { %p534_p7 = pnand %p533_p10, %p527_p9 }
  0x25   : > { %537 = shalt.err (!%p534_p7)
}
  0x26   : > { %463 = dma.hbm_to_vmem [thread:$0]  (!%p721_p8), %s730_s29, 128, %s167_s4, %s735_s5  }
  0x27   : > { %p868_p0 = scmp.lt.s32.totalorder %s646_s15, 4  ;;  %p869_p1 = scmp.ge.s32.totalorder %s646_s15, 1 }
  0x28   : > { %s772_s8 = scalar_lea.hbm %s860_s0, %s719_s24  ;;  %s141_s9 = scalar_lea.vmem [#allocation3], %s716_s23 }
  0x29   : > { %p764_p2 = pnand %p869_p1, %p868_p0  ;;  %s148_s10 = sshll.u32 %s141_s9, 4  ;;  %s149_s10 = int_to_ptr.vmem [resolvable:$true] %s148_s10 }
  0x2a   : > { %s779_s29 = scalar_lea.hbm %s862_s2, %s719_s24  ;;  %s138_s15 = scalar_lea.sflag [#allocation4], %s137_s22 }
  0x2b   : > { %s870_s28 = scalar_select %p764_p2, 1, 0 }
  0x2c   : > { %s538_s4 = scalar_lea.hbm %s772_s8, 128  ;;  %s543_s26 = scalar_lea.hbm %s860_s0, 384 }
  0x2d   : > { %p539_p7 = scmp.ne.s32.totalorder %s772_s8, %s538_s4  ;;  %p544_p3 = scmp.lt.s32.totalorder %s772_s8, %s860_s0 }
  0x2e   : > { %p545_p4 = scmp.lt.s32.totalorder %s543_s26, %s538_s4 }
  0x2f   : > { %p541_p9 = pnand %p539_p7, %p741_p12 }
  0x30   : > { %p546_p5 = por %p545_p4, %p544_p3 }
  0x31   : > { %p542_p10 = pneg %p541_p9 }
  0x33   : > { %p547_p6 = pnand %p546_p5, %p542_p10 }
  0x35   : > { %550 = shalt.err (!%p547_p6)
}
  0x36   : > { %s551_s24 = scalar_lea.vmem %s149_s10, 128  ;;  %s649_s22 = smov [#allocation3]  }
  0x37   : > { %p552_p11 = scmp.ne.s32.totalorder %s149_s10, %s551_s24  ;;  %s556_s6 = sshll.u32 %s649_s22, 4  ;;  %s557_s6 = int_to_ptr.vmem [resolvable:$false] %s556_s6 }
  0x38   : > { %s558_s9 = scalar_lea.vmem %s557_s6, 256  ;;  %p559_p1 = scmp.lt.s32.totalorder %s149_s10, %s557_s6 }
  0x39   : > { %p554_p13 = pnand %p552_p11, %p741_p12  ;;  %p560_p7 = scmp.lt.s32.totalorder %s558_s9, %s551_s24 }
  0x3b   : > { %p555_p0 = pneg %p554_p13  ;;  %p561_p9 = por %p560_p7, %p559_p1 }
  0x3d   : > { %p562_p2 = pnand %p561_p9, %p555_p0 }
  0x3f   : > { %565 = shalt.err (!%p562_p2)
}
  0x40   : > { %460 = dma.hbm_to_vmem [thread:$0]  (!%p721_p8), %s772_s8, 128, %s149_s10, %s138_s15  }
  0x41   : > { %s177_s11 = scalar_lea.vmem [#allocation8], %s716_s23  ;;  %s566_s4 = scalar_lea.hbm %s779_s29, 128 }
  0x42   : > { %s184_s12 = sshll.u32 %s177_s11, 4  ;;  %p567_p10 = scmp.ne.s32.totalorder %s779_s29, %s566_s4  ;;  %s185_s12 = int_to_ptr.vmem [resolvable:$true] %s184_s12 }
  0x43   : > { %s571_s26 = scalar_lea.hbm %s862_s2, 384  ;;  %p572_p2 = scmp.lt.s32.totalorder %s779_s29, %s862_s2 }
  0x44   : > { %p569_p3 = pnand %p567_p10, %p741_p12  ;;  %p573_p5 = scmp.lt.s32.totalorder %s571_s26, %s566_s4 }
  0x46   : > { %p570_p4 = pneg %p569_p3  ;;  %p574_p6 = por %p573_p5, %p572_p2 }
  0x48   : > { %p575_p11 = pnand %p574_p6, %p570_p4 }
  0x4a   : > { %578 = shalt.err (!%p575_p11)
}
  0x4b   : > { %s579_s23 = scalar_lea.vmem %s185_s12, 128  ;;  %s650_s8 = smov [#allocation8]  }
  0x4c   : > { %p580_p13 = scmp.ne.s32.totalorder %s185_s12, %s579_s23  ;;  %s584_s10 = sshll.u32 %s650_s8, 4  ;;  %s585_s10 = int_to_ptr.vmem [resolvable:$false] %s584_s10 }
  0x4d   : > { %s586_s15 = scalar_lea.vmem %s585_s10, 256  ;;  %p587_p7 = scmp.lt.s32.totalorder %s185_s12, %s585_s10 }
  0x4e   : > { %p582_p0 = pnand %p580_p13, %p741_p12  ;;  %p588_p9 = scmp.lt.s32.totalorder %s586_s15, %s579_s23 }
  0x50   : > { %p583_p1 = pneg %p582_p0  ;;  %p589_p10 = por %p588_p9, %p587_p7 }
  0x52   : > { %p590_p3 = pnand %p589_p10, %p583_p1 }
  0x54   : > { %593 = shalt.err (!%p590_p3)
}
  0x55   : > { %466 = dma.hbm_to_vmem [thread:$0]  (!%p721_p8), %s779_s29, 128, %s185_s12, %s735_s5  }
  0x56   : > { %p871_p4 = scmp.ne.s32.totalorder %s870_s28, 0 }
  0x57   : > { %s195_s7 = sand.u32 (!%p871_p4), 1, %s638_s13   ;;  %p872_p12 = scmp.ne.s32.totalorder (!%p871_p4), %s865_s21, 0 }
  0x58   : > { %193 = sbr.rel (%p871_p4) target bundleno = 393 (0x189), region = 32  ;;  %s820_s24 = sshll.u32 (!%p871_p4), %s195_s7, 3 }
  0x59   : > { %s196_s22 = scalar_lea.sflag (!%p871_p4), [#allocation4], %s195_s7  ;;  %s199_s6 = scalar_lea.vmem (!%p871_p4), [#allocation3], %s820_s24 }
  0x5d   : > { %621 = dma.done.wait (%p872_p12), %s196_s22, 128  }
  0x5e   : > { %623 = vsyncadd (%p872_p12), %s196_s22, 4294967168  ;;  %s204_s25 = sand.u32 1, %s692_s16   ;;  %s208_s28 = scalar_lea.vmem [#allocation6], %s820_s24 }
  0x5f   : > { %s205_s5 = scalar_lea.sflag [#allocation7], %s204_s25 }
  0x60   : > { %625 = dma.done.wait (%p872_p12), %s205_s5, 256  }
  0x61   : > { %627 = vsyncadd (%p872_p12), %s205_s5, 4294967040  ;;  %s217_s29 = scalar_lea.vmem [#allocation8], %s820_s24  ;;  %p438_p8 = scmp.ne.s32.totalorder %s692_s16, 0 }
  0x63   : > { %248 = sbr.rel (%p438_p8) target bundleno = 106 (0x6a), region = 48 }
  0x68   : > { %v651_v0 = vmov 0.0  }
  0x69   : > { %249 = vst [vmem:[#allocation2] sm:$0xff] %v651_v0 }
  0x6a PF: > { %v250_v1 = vlaneseq  ;;  %s439_s9 = sshll.u32 %s692_s16, 3  ;;  %v260_v8 = vld [vmem:[%s199_s6] sm:$0xff]  ;;  %v262_v15 = vld [vmem:[%s208_s28] sm:$0xff]  ;;  %p440_p2 = scmp.ne.s32.totalorder %s692_s16, 2 }
  0x6b   : > { %v255_v2 = vstv %s439_s9  ;;  %v264_v28 = vld [vmem:[%s217_s29] sm:$0xff] }
  0x6c   : > { %v251_v3 = vshrl.u32 %v250_v1, 7  ;;  %v253_v4 = vand.u32 127, %v250_v1 }
  0x6e   : > { %v256_v5 = vadd.s32 %v255_v2, %v251_v3 }
  0x70   : > { %v257_v6 = vmul.u32 128, %v256_v5  ;;  %v307_v51 = vld [vmem:[#allocation2] sm:$0xff] }
  0x72   : > { %v258_v7 = vadd.s32 %v257_v6, %v253_v4 }
  0x74   : > { %vm259_vm0 = vcmp.lt.s32.totalorder %v258_v7, 2100 }
  0x75   : > { %v261_v9 = vsel %vm259_vm0, %v260_v8, 0.0  ;;  %v263_v16 = vsel %vm259_vm0, %v262_v15, 0.0  ;;  %v265_v38 = vsel %vm259_vm0, %v264_v28, 0.0 }
  0x76   : > { %v266_v10 = vand.u32 2147483647, %v261_v9  ;;  %vm272_vm1 = vcmp.ge.f32.partialorder %v261_v9, 0.0  ;;  %v290_v20 = vsub.f32 1.0, %v263_v16  ;;  %v275_v29 = vmax.f32 %v261_v9, 0.0 }
  0x77   : > { %v276_v30 = vmul.f32 %v263_v16, %v261_v9  ;;  %v296_v34 = vmul.f32 0.25, %v263_v16 }
  0x78   : > { %v267_v11 = vsub.f32 0.0, %v266_v10  ;;  %v297_v36 = vmul.f32 0.75, %v290_v20 }
  0x79   : > { %v277_v39 = vsub.f32 %v275_v29, %v276_v30 }
  0x7a   : > { %v268_v12 = vmul.f32 1.442695, %v267_v11  ;;  %v298_v43 = vadd.f32 %v297_v36, %v296_v34 }
  0x7c   : > { %504 = vpow2.f32 %v268_v12 }
  0x89   : > { %v505_v13 = vpop.eup %504 }
  0x8a   : > { %v270_v14 = vadd.f32 1.0, %v505_v13  ;;  %v281_v17 = vmul.f32 -0.5, %v505_v13  ;;  %v284_v24 = vand.u32 2147483647, %v505_v13 }
  0x8c   : > { %506 = vrcp.f32 %v270_v14  ;;  %v282_v22 = vadd.f32 1.0, %v281_v17  ;;  %vm285_vm2 = vcmp.lt.f32.partialorder %v284_v24, 0.0004427343 }
  0x8d   : > { %508 = vlog2.f32 %v270_v14 }
  0x8e   : > { %v283_v33 = vmul.f32 %v505_v13, %v282_v22 }
  0x99   : > { %v507_v18 = vpop.eup %506 }
  0x9a   : > { %v273_v19 = vmul.f32 %v507_v18, %v505_v13  ;;  %v509_v23 = vpop.eup %508 }
  0x9b   : > { %v280_v32 = vmul.f32 0.6931472, %v509_v23 }
  0x9c   : > { %v274_v21 = vsel %vm272_vm1, %v507_v18, %v273_v19 }
  0x9d   : > { %v288_v25 = vmul.f32 %v274_v21, %v263_v16  ;;  %v289_v26 = vsub.f32 1.0, %v274_v21  ;;  %v301_v27 = vsub.f32 %v274_v21, %v263_v16  ;;  %v286_v41 = vsel %vm285_vm2, %v283_v33, %v280_v32 }
  0x9e   : > { %v287_v45 = vadd.f32 %v286_v41, %v277_v39 }
  0x9f   : > { %v291_v31 = vmul.f32 %v290_v20, %v289_v26  ;;  %v302_v37 = vand.u32 2147483647, %v301_v27 }
  0xa1   : > { %v292_v35 = vadd.f32 %v291_v31, %v288_v25  ;;  %v303_v44 = vmul.f32 %v302_v37, %v265_v38 }
  0xa3   : > { %v293_v40 = vsub.f32 1.0, %v292_v35  ;;  %v304_v48 = vmul.f32 0.1, %v303_v44 }
  0xa5   : > { %v294_v42 = vmax.f32 %v293_v40, 0.0 }
  0xa7   : > { %v295_v46 = vmul.f32 %v294_v42, %v294_v42 }
  0xa9   : > { %v299_v47 = vmul.f32 %v298_v43, %v295_v46 }
  0xab   : > { %v300_v49 = vmul.f32 %v299_v47, %v287_v45 }
  0xad   : > { %v305_v50 = vadd.f32 %v304_v48, %v300_v49 }
  0xae   : > { %313 = sbr.rel (%p440_p2) target bundleno = 387 (0x183), region = 52 }
  0xaf   : > { %v306_v52 = vsel %vm259_vm0, %v305_v50, 0.0 }
  0xb0   : > { %v308_v53 = vadd.f32 %v307_v51, %v306_v52 }
  0xb2   : > { %309 = vst [vmem:[#allocation2] sm:$0xff] %v308_v53 }
  0xb9   : > { %v314_v54 = vld [vmem:[#allocation2] sm:$0xff] }
  0xba   : > { %315 = vadd.xlane.f32.xlu0 %v314_v54 }
 0x143   : > { %v316_v55 = vpop.xlane.xlu0 %315 }
 0x144   : > { %v317_v56 = vrot.slane %v316_v55, 4 }
 0x146   : > { %v318_v57 = vadd.f32 %v317_v56, %v316_v55 }
 0x148   : > { %v319_v58 = vrot.slane %v318_v57, 2 }
 0x14a   : > { %v320_v59 = vadd.f32 %v319_v58, %v318_v57 }
 0x14c   : > { %v321_v60 = vrot.slane %v320_v59, 1 }
 0x14e   : > { %v322_v61 = vadd.f32 %v321_v60, %v320_v59 }
 0x150   : > { %445 = vpush %v322_v61 }
 0x181   : > { %s446_s21 = spop %445 }
 0x182   : > { %325 = sst [smem:[#allocation9]] %s446_s21 }
 0x183 PF: > { %p468_p5 = scmp.eq.s32.totalorder %s692_s16, 2  ;;  %s652_s11 = smov [#allocation9]  }
 0x185   : > { %454 = dma.smem_to_hbm (%p468_p5), %s652_s11, 16, %s863_s3, [#allocation5]  }
 0x186   : > { %629 = dma.done.wait (%p468_p5), [#allocation5], 16  }
 0x187   : > { %631 = vsyncadd (%p468_p5), [#allocation5], 4294967280 }
 0x188   : > { %339 = sfence }
 0x189 PF: > { %p17_p6 = scmp.ge.s32.totalorder %s695_s17, 5   ;;  %s873_s12 = smov %s638_s13 }
 0x18a   : > { %s874_s13 = smov %s642_s14  ;;  %s875_s14 = smov %s705_s20 }
 0x18b   : > { %s876_s15 = smov %s695_s17  ;;  %19 = sbr.rel (!%p17_p6) target bundleno = 6 (0x6), region = 102 }
 0x190   :  { %345 = vsyncpa [#allocation4], 1 }
 0x191   :  { %347 = vsyncpa [#allocation4 + $0x1], 1 }
 0x192   :  { %348 = vsyncpa [#allocation7], 1 }
 0x193   :  { %350 = vsyncpa [#allocation7 + $0x1], 1 }
 0x194   :  { %351 = vsyncpa [#allocation5], 1 }
 0x195   :  { %353 = vsyncpa [#allocation5 + $0x1], 1 }

</bundles_post_ra>
